<compile_context>
chip_gen: v7x
topology: tpu7x:2x2x1
jax: 0.10.0
libtpu: 0.0.40
codegen_flags: <defaults>
</compile_context>

<pallas_src>
import functools
import numpy as np
import jax
import jax.numpy as jnp
from jax.experimental import pallas as pl
from jax.experimental.pallas import tpu as pltpu

NHEAD = 8
_F32 = 4
_BF16 = 2


def _mha_global_head_kernel(x0_ref, x_ref, te_ref, mb_ref, sel_ref,
                            wq_ref, wk_ref, wv_ref, wo_ref,
                            bq_ref, bk_ref, bv_ref, bo_ref,
                            out_ref, attn_ref, *, nhead):
    """One (TB, L, D) batch tile per grid step; all heads fused, lane-dense softmax."""
    TB, L, D = x_ref.shape
    f32 = jnp.float32

    x = x_ref[...]                                   # (TB, L, D) bf16
    te = te_ref[...]                                 # (TB, L, D) bf16
    x0 = x0_ref[...]                                 # (TB, D)    bf16 query-token stream
    mb = mb_ref[...]                                 # (TB, L)    f32 additive key bias
    sel = sel_ref[...]                               # (H, D)     f32 head selector

    k_in = (x + te).reshape(TB * L, D)               # bf16; free reshape (L % 8 == 0)
    x_flat = x.reshape(TB * L, D)

    # ---- in-projections: bf16 operands, f32 accumulation on the MXU ----
    # 1/sqrt(dh) is already folded into wq/bq by the wrapper.
    q = jnp.dot(x0, wq_ref[...], preferred_element_type=f32) + bq_ref[...]       # (TB, D)
    k = jnp.dot(k_in, wk_ref[...], preferred_element_type=f32) + bk_ref[...]     # (TB*L, D)
    v = jnp.dot(x_flat, wv_ref[...], preferred_element_type=f32) + bv_ref[...]   # (TB*L, D)
    k3 = k.reshape(TB, L, D)
    v3 = v.reshape(TB, L, D)

    # ---- all-head scores with keys on the lane axis: s[b, h, l] (f32) ----
    q_exp = q[:, None, :] * sel[None, :, :]          # (TB, H, D): q restricted per head
    s = jax.lax.dot_general(q_exp, k3, (((2,), (2,)), ((0,), (0,))),
                            preferred_element_type=f32)                           # (TB, H, L)
    s = s + mb[:, None, :]                           # key-padding bias, bcast over heads

    # ---- one lane-dense softmax over keys for every (batch, head), all in f32 ----
    s = s - jnp.max(s, axis=-1, keepdims=True)
    p = jnp.exp(s)
    denom = jnp.sum(p, axis=-1, keepdims=True)       # (TB, H, 1)
    a = p * pl.reciprocal(denom, approx=True)        # (TB, H, L)

    # ---- weighted values: batched matmul, then pick each head's diagonal block ----
    ctx_h = jax.lax.dot_general(a, v3, (((2,), (1,)), ((0,), (0,))),
                                preferred_element_type=f32)                       # (TB, H, D)
    ctx = jnp.sum(ctx_h * sel[None, :, :], axis=1)   # (TB, D)

    out = jnp.dot(ctx.astype(wo_ref.dtype), wo_ref[...],
                  preferred_element_type=f32) + bo_ref[...]                        # (TB, D)
    out_ref[...] = out.astype(out_ref.dtype)
    attn_ref[...] = (jnp.sum(a, axis=1) * (1.0 / nhead)).astype(attn_ref.dtype)


def _vmem_capacity_bytes():
    try:
        cap = getattr(pltpu.get_tpu_info(), "vmem_capacity_bytes", None)
        if cap:
            return int(cap)
    except Exception:
        pass
    return 64 * 2 ** 20          # conservative default (v7x has 64 MiB per TC)


def _tile_vmem_bytes(tb, L, D, nhead):
    """Rough per-grid-step VMEM footprint for batch tile tb (streams double-buffered)."""
    streams = 2 * (2 * tb * L * D * _BF16 + tb * D * _BF16 + tb * L * _F32)
    inter = 4 * tb * L * D * _F32                        # k3, v3 + slack for fused temps
    heads = 4 * tb * nhead * max(L, D) * _F32            # q_exp, s/p/a, ctx_h
    outs = 2 * (tb * D + tb * L) * _F32
    return streams + inter + heads + outs


def _const_vmem_bytes(D, nhead):
    # weights / biases / selector; x2 in case the pipeline double-buffers constant blocks
    return 2 * (4 * D * D * _BF16 + 4 * D * _F32 + nhead * D * _F32)


def _pick_batch_tile(B, L, D, nhead, vmem_cap):
    """8-aligned (or full-batch) tile; prefers TB*L >= 512 MXU rows and an even grid."""
    budget = int(0.6 * vmem_cap) - _const_vmem_bytes(D, nhead)
    per_b = max(1, _tile_vmem_bytes(1, L, D, nhead))
    cap = max(1, budget // per_b)
    if B <= cap:
        divs8 = [t for t in range(8, B, 8) if B % t == 0 and t <= cap]
        good = [t for t in divs8 if t * L >= 512 and (B // t) % 2 == 0]
        return max(good) if good else B
    divs8 = [t for t in range(8, min(B, cap) + 1, 8) if B % t == 0]
    if divs8:
        good = [t for t in divs8 if (B // t) % 2 == 0] or divs8
        return max(good)
    # No aligned divisor fits: wrapper pads B up to a multiple of this tile.
    return max(8, (cap // 8) * 8)


def multihead_attention_global_head(x, type_embedding, mask, params, nhead=NHEAD,
                                    batch_tile=None):
    """Wrapper: pads L/B, folds scale, casts to bf16, and launches the Pallas kernel."""
    B, L, D = x.shape
    assert D % nhead == 0, "d_model must be divisible by nhead"
    dh = D // nhead

    # --- pad keys so L % 8 == 0 (free (TB*L, D) reshapes); padded keys are masked out ---
    Lp = -(-L // 8) * 8
    if Lp != L:
        pad3 = ((0, 0), (0, Lp - L), (0, 0))
        x = jnp.pad(x, pad3)
        type_embedding = jnp.pad(type_embedding, pad3)
        mask = jnp.pad(mask, ((0, 0), (0, Lp - L)), constant_values=True)

    vmem_cap = _vmem_capacity_bytes()
    tb = batch_tile if batch_tile is not None else _pick_batch_tile(B, Lp, D, nhead, vmem_cap)

    # --- pad batch so the tile divides it; padded rows are discarded at the end ---
    Bp = -(-B // tb) * tb
    if Bp != B:
        padb3 = ((0, Bp - B), (0, 0), (0, 0))
        x = jnp.pad(x, padb3)
        type_embedding = jnp.pad(type_embedding, padb3)
        mask = jnp.pad(mask, ((0, Bp - B), (0, 0)))
    grid = (Bp // tb,)

    # --- dtypes: bf16 streams + weights for the MXU / HBM roofline; f32 softmax math ---
    x_bf = x.astype(jnp.bfloat16)
    te_bf = type_embedding.astype(jnp.bfloat16)
    x0_bf = x_bf[:, 0, :]                                              # (Bp, D)
    mask_bias = jnp.where(mask, jnp.float32(-1e30), jnp.float32(0.0))  # (Bp, Lp) lane-dense

    # PyTorch linear: y = x @ W^T + b  ->  pass W^T; fold 1/sqrt(dh) into the q projection.
    scale = 1.0 / float(np.sqrt(dh))
    w_in = params["in_proj_weight"]
    b_in = params["in_proj_bias"]
    wq = (w_in[0 * D:1 * D] * scale).T.astype(jnp.bfloat16)
    wk = w_in[1 * D:2 * D].T.astype(jnp.bfloat16)
    wv = w_in[2 * D:3 * D].T.astype(jnp.bfloat16)
    wo = params["out_proj_weight"].T.astype(jnp.bfloat16)
    bq = (b_in[0 * D:1 * D] * scale).reshape(1, D).astype(jnp.float32)
    bk = b_in[1 * D:2 * D].reshape(1, D).astype(jnp.float32)
    bv = b_in[2 * D:3 * D].reshape(1, D).astype(jnp.float32)
    bo = params["out_proj_bias"].reshape(1, D).astype(jnp.float32)

    # Static (H, D) block-diagonal head selector, built once (hoisted out of the kernel).
    sel = (jnp.arange(D)[None, :] // dh == jnp.arange(nhead)[:, None]).astype(jnp.float32)

    # --- explicit scoped-VMEM limit: streams + f32 intermediates + constants, + headroom ---
    vmem_needed = _tile_vmem_bytes(tb, Lp, D, nhead) + _const_vmem_bytes(D, nhead)
    vmem_limit = int(min(int(0.75 * vmem_cap), max(32 * 2 ** 20, 2 * vmem_needed)))

    kern = functools.partial(_mha_global_head_kernel, nhead=nhead)

    def const_spec(shape):
        # TODO(synk): pipeline_mode=pl.Buffered(1) would single-buffer these constant
        # blocks; left at the default to stay conservative about compiler support.
        return pl.BlockSpec(shape, lambda b: (0,) * len(shape))

    out, attn = pl.pallas_call(
        kern,
        grid=grid,
        in_specs=[
            pl.BlockSpec((tb, D), lambda b: (b, 0)),           # x[:, 0, :] query stream
            pl.BlockSpec((tb, Lp, D), lambda b: (b, 0, 0)),    # inputs
            pl.BlockSpec((tb, Lp, D), lambda b: (b, 0, 0)),    # type_embedding
            pl.BlockSpec((tb, Lp), lambda b: (b, 0)),          # mask bias (lane-dense)
            const_spec((nhead, D)),                            # head selector
            const_spec((D, D)), const_spec((D, D)),
            const_spec((D, D)), const_spec((D, D)),            # wq wk wv wo (bf16)
            const_spec((1, D)), const_spec((1, D)),
            const_spec((1, D)), const_spec((1, D)),            # bq bk bv bo (f32)
        ],
        out_specs=(
            pl.BlockSpec((tb, D), lambda b: (b, 0)),           # outputs, lane-dense slab
            pl.BlockSpec((tb, Lp), lambda b: (b, 0)),          # attn weights, lane-dense
        ),
        out_shape=(
            jax.ShapeDtypeStruct((Bp, D), jnp.float32),
            jax.ShapeDtypeStruct((Bp, Lp), jnp.float32),
        ),
        compiler_params=pltpu.CompilerParams(
            dimension_semantics=("parallel",),
            vmem_limit_bytes=vmem_limit),
    )(x0_bf, x_bf, te_bf, mask_bias, sel, wq, wk, wv, wo, bq, bk, bv, bo)

    return out[:B], attn[:B, :L]


def init_params(key, d_model):
    """Deterministic synthetic init mirroring nn.MultiheadAttention parameter shapes."""
    k1, k2, k3, k4 = jax.random.split(key, 4)
    lim = 1.0 / np.sqrt(d_model)
    return {
        "in_proj_weight": jax.random.uniform(k1, (3 * d_model, d_model), jnp.float32, -lim, lim),
        "in_proj_bias": jax.random.uniform(k2, (3 * d_model,), jnp.float32, -lim, lim),
        "out_proj_weight": jax.random.uniform(k3, (d_model, d_model), jnp.float32, -lim, lim),
        "out_proj_bias": jax.random.uniform(k4, (d_model,), jnp.float32, -lim, lim),
    }


def reference(x, te, mask, params, nhead=NHEAD):
    """Pure-JAX f32 reference of the PyTorch forward (eval mode)."""
    B, L, D = x.shape
    dh = D // nhead
    Wq, Wk, Wv = (params["in_proj_weight"][i * D:(i + 1) * D] for i in range(3))
    bq, bk, bv = (params["in_proj_bias"][i * D:(i + 1) * D] for i in range(3))
    q = x[:, 0:1, :] @ Wq.T + bq            # (B, 1, D)
    k = (x + te) @ Wk.T + bk                # (B, L, D)
    v = x @ Wv.T + bv                       # (B, L, D)
    qh = q.reshape(B, 1, nhead, dh).transpose(0, 2, 1, 3)
    kh = k.reshape(B, L, nhead, dh).transpose(0, 2, 1, 3)
    vh = v.reshape(B, L, nhead, dh).transpose(0, 2, 1, 3)
    s = jnp.einsum("bhqd,bhkd->bhqk", qh, kh) / np.sqrt(dh)
    s = jnp.where(mask[:, None, None, :], -1e30, s)
    a = jax.nn.softmax(s, axis=-1)          # (B, H, 1, L)
    o = jnp.einsum("bhqk,bhkd->bhqd", a, vh).transpose(0, 2, 1, 3).reshape(B, 1, D)
    out = o @ params["out_proj_weight"].T + params["out_proj_bias"]
    return out.reshape(B, D), a.mean(axis=1).reshape(B, L)


if __name__ == "__main__":
    B, L, D, H = 2, 8, 32, 8
    key = jax.random.PRNGKey(0)
    kx, kt, kp = jax.random.split(key, 3)

    x = jax.random.normal(kx, (B, L, D), jnp.float32)
    type_embedding = jax.random.normal(kt, (B, L, D), jnp.float32)
    # Mask out the last two key positions of every batch element.
    mask = jnp.broadcast_to(jnp.arange(L)[None, :] >= (L - 2), (B, L))
    params = init_params(kp, D)

    fn = jax.jit(multihead_attention_global_head, static_argnums=(4,))
    out, attn = fn(x, type_embedding, mask, params, H)
    jax.block_until_ready((out, attn))

    ref_out, ref_attn = reference(x, type_embedding, mask, params, H)
    np.testing.assert_allclose(np.asarray(out), np.asarray(ref_out), rtol=2e-2, atol=2e-2)
    np.testing.assert_allclose(np.asarray(attn), np.asarray(ref_attn), rtol=2e-2, atol=2e-2)
    assert out.shape == (B, D) and attn.shape == (B, L)

    print("KERNEL_OK")
</pallas_src>

<mosaic_0001>
module attributes {stable_mosaic.version = 11 : i64} {
  func.func @_mha_global_head_kernel(%arg0: i32, %arg1: memref<2x32xbf16, #tpu.memory_space<vmem>>, %arg2: memref<2x8x32xbf16, #tpu.memory_space<vmem>>, %arg3: memref<2x8x32xbf16, #tpu.memory_space<vmem>>, %arg4: memref<2x8xf32, #tpu.memory_space<vmem>>, %arg5: memref<8x32xf32, #tpu.memory_space<vmem>>, %arg6: memref<32x32xbf16, #tpu.memory_space<vmem>>, %arg7: memref<32x32xbf16, #tpu.memory_space<vmem>>, %arg8: memref<32x32xbf16, #tpu.memory_space<vmem>>, %arg9: memref<32x32xbf16, #tpu.memory_space<vmem>>, %arg10: memref<1x32xf32, #tpu.memory_space<vmem>>, %arg11: memref<1x32xf32, #tpu.memory_space<vmem>>, %arg12: memref<1x32xf32, #tpu.memory_space<vmem>>, %arg13: memref<1x32xf32, #tpu.memory_space<vmem>>, %arg14: memref<2x32xf32, #tpu.memory_space<vmem>>, %arg15: memref<2x8xf32, #tpu.memory_space<vmem>>) attributes {dimension_semantics = [#tpu.dimension_semantics<parallel>], iteration_bounds = array<i64: 1>, scalar_prefetch = 0 : i64, scratch_operands = 0 : i64, tpu.core_type = #tpu.core_type<tc>, window_params = [{transform_indices = @transform_0, window_bounds = array<i64: 2, 32>}, {transform_indices = @transform_1, window_bounds = array<i64: 2, 8, 32>}, {transform_indices = @transform_2, window_bounds = array<i64: 2, 8, 32>}, {transform_indices = @transform_3, window_bounds = array<i64: 2, 8>}, {pipeline_mode = #tpu.pipeline_mode<synchronous>, transform_indices = @transform_4, window_bounds = array<i64: 8, 32>}, {pipeline_mode = #tpu.pipeline_mode<synchronous>, transform_indices = @transform_5, window_bounds = array<i64: 32, 32>}, {pipeline_mode = #tpu.pipeline_mode<synchronous>, transform_indices = @transform_6, window_bounds = array<i64: 32, 32>}, {pipeline_mode = #tpu.pipeline_mode<synchronous>, transform_indices = @transform_7, window_bounds = array<i64: 32, 32>}, {pipeline_mode = #tpu.pipeline_mode<synchronous>, transform_indices = @transform_8, window_bounds = array<i64: 32, 32>}, {pipeline_mode = #tpu.pipeline_mode<synchronous>, transform_indices = @transform_9, window_bounds = array<i64: 1, 32>}, {pipeline_mode = #tpu.pipeline_mode<synchronous>, transform_indices = @transform_10, window_bounds = array<i64: 1, 32>}, {pipeline_mode = #tpu.pipeline_mode<synchronous>, transform_indices = @transform_11, window_bounds = array<i64: 1, 32>}, {pipeline_mode = #tpu.pipeline_mode<synchronous>, transform_indices = @transform_12, window_bounds = array<i64: 1, 32>}, {transform_indices = @transform_13, window_bounds = array<i64: 2, 32>}, {transform_indices = @transform_14, window_bounds = array<i64: 2, 8>}]} {
    %c0 = arith.constant 0 : index
    %c0_0 = arith.constant 0 : index
    %c0_1 = arith.constant 0 : index
    %0 = vector.load %arg2[%c0, %c0_0, %c0_1] : memref<2x8x32xbf16, #tpu.memory_space<vmem>>, vector<2x8x32xbf16>
    %c0_2 = arith.constant 0 : index
    %c0_3 = arith.constant 0 : index
    %c0_4 = arith.constant 0 : index
    %1 = vector.load %arg3[%c0_2, %c0_3, %c0_4] : memref<2x8x32xbf16, #tpu.memory_space<vmem>>, vector<2x8x32xbf16>
    %c0_5 = arith.constant 0 : index
    %c0_6 = arith.constant 0 : index
    %2 = vector.load %arg1[%c0_5, %c0_6] : memref<2x32xbf16, #tpu.memory_space<vmem>>, vector<2x32xbf16>
    %c0_7 = arith.constant 0 : index
    %c0_8 = arith.constant 0 : index
    %3 = vector.load %arg4[%c0_7, %c0_8] : memref<2x8xf32, #tpu.memory_space<vmem>>, vector<2x8xf32>
    %c0_9 = arith.constant 0 : index
    %c0_10 = arith.constant 0 : index
    %4 = vector.load %arg5[%c0_9, %c0_10] : memref<8x32xf32, #tpu.memory_space<vmem>>, vector<8x32xf32>
    %5 = arith.addf %0, %1 : vector<2x8x32xbf16>
    %6 = vector.shape_cast %5 : vector<2x8x32xbf16> to vector<16x32xbf16>
    %7 = vector.shape_cast %0 : vector<2x8x32xbf16> to vector<16x32xbf16>
    %c0_11 = arith.constant 0 : index
    %c0_12 = arith.constant 0 : index
    %8 = vector.load %arg6[%c0_11, %c0_12] : memref<32x32xbf16, #tpu.memory_space<vmem>>, vector<32x32xbf16>
    %cst = arith.constant dense<0.000000e+00> : vector<2x32xf32>
    %9 = tpu.matmul %2, %8, %cst {dimension_numbers = #tpu.dot_dimension_numbers<[1], [0], [0], [1], [0, 0, 1, 1], [], []>} : vector<2x32xbf16>, vector<32x32xbf16>, vector<2x32xf32> -> vector<2x32xf32>
    %c0_13 = arith.constant 0 : index
    %c0_14 = arith.constant 0 : index
    %10 = vector.load %arg10[%c0_13, %c0_14] : memref<1x32xf32, #tpu.memory_space<vmem>>, vector<1x32xf32>
    %11 = vector.broadcast %10 : vector<1x32xf32> to vector<2x32xf32>
    %12 = arith.addf %9, %11 : vector<2x32xf32>
    %c0_15 = arith.constant 0 : index
    %c0_16 = arith.constant 0 : index
    %13 = vector.load %arg7[%c0_15, %c0_16] : memref<32x32xbf16, #tpu.memory_space<vmem>>, vector<32x32xbf16>
    %cst_17 = arith.constant dense<0.000000e+00> : vector<16x32xf32>
    %14 = tpu.matmul %6, %13, %cst_17 {dimension_numbers = #tpu.dot_dimension_numbers<[1], [0], [0], [1], [0, 0, 1, 1], [], []>} : vector<16x32xbf16>, vector<32x32xbf16>, vector<16x32xf32> -> vector<16x32xf32>
    %c0_18 = arith.constant 0 : index
    %c0_19 = arith.constant 0 : index
    %15 = vector.load %arg11[%c0_18, %c0_19] : memref<1x32xf32, #tpu.memory_space<vmem>>, vector<1x32xf32>
    %16 = vector.broadcast %15 : vector<1x32xf32> to vector<16x32xf32>
    %17 = arith.addf %14, %16 : vector<16x32xf32>
    %c0_20 = arith.constant 0 : index
    %c0_21 = arith.constant 0 : index
    %18 = vector.load %arg8[%c0_20, %c0_21] : memref<32x32xbf16, #tpu.memory_space<vmem>>, vector<32x32xbf16>
    %cst_22 = arith.constant dense<0.000000e+00> : vector<16x32xf32>
    %19 = tpu.matmul %7, %18, %cst_22 {dimension_numbers = #tpu.dot_dimension_numbers<[1], [0], [0], [1], [0, 0, 1, 1], [], []>} : vector<16x32xbf16>, vector<32x32xbf16>, vector<16x32xf32> -> vector<16x32xf32>
    %c0_23 = arith.constant 0 : index
    %c0_24 = arith.constant 0 : index
    %20 = vector.load %arg12[%c0_23, %c0_24] : memref<1x32xf32, #tpu.memory_space<vmem>>, vector<1x32xf32>
    %21 = vector.broadcast %20 : vector<1x32xf32> to vector<16x32xf32>
    %22 = arith.addf %19, %21 : vector<16x32xf32>
    %23 = vector.shape_cast %17 : vector<16x32xf32> to vector<2x8x32xf32>
    %24 = vector.shape_cast %22 : vector<16x32xf32> to vector<2x8x32xf32>
    %25 = vector.shape_cast %12 : vector<2x32xf32> to vector<2x1x32xf32>
    %26 = vector.shape_cast %4 : vector<8x32xf32> to vector<1x8x32xf32>
    %27 = vector.broadcast %25 : vector<2x1x32xf32> to vector<2x8x32xf32>
    %28 = vector.broadcast %26 : vector<1x8x32xf32> to vector<2x8x32xf32>
    %29 = arith.mulf %27, %28 : vector<2x8x32xf32>
    %cst_25 = arith.constant dense<0.000000e+00> : vector<2x8x8xf32>
    %30 = tpu.matmul %29, %23, %cst_25 {dimension_numbers = #tpu.dot_dimension_numbers<[2], [2], [1], [1], [0, 0, 0, 1, 1, 1], [0], [0]>} : vector<2x8x32xf32>, vector<2x8x32xf32>, vector<2x8x8xf32> -> vector<2x8x8xf32>
    %31 = vector.shape_cast %3 : vector<2x8xf32> to vector<2x1x8xf32>
    %32 = vector.broadcast %31 : vector<2x1x8xf32> to vector<2x8x8xf32>
    %33 = arith.addf %30, %32 : vector<2x8x8xf32>
    %cst_26 = arith.constant dense<0xFF800000> : vector<2x8xf32>
    %34 = vector.multi_reduction <maximumf>, %33, %cst_26 [2] : vector<2x8x8xf32> to vector<2x8xf32>
    %35 = vector.shape_cast %34 : vector<2x8xf32> to vector<2x8x1xf32>
    %36 = vector.broadcast %35 : vector<2x8x1xf32> to vector<2x8x8xf32>
    %37 = arith.subf %33, %36 : vector<2x8x8xf32>
    %38 = math.exp %37 : vector<2x8x8xf32>
    %cst_27 = arith.constant dense<0.000000e+00> : vector<2x8xf32>
    %39 = vector.multi_reduction <add>, %38, %cst_27 [2] : vector<2x8x8xf32> to vector<2x8xf32>
    %40 = vector.shape_cast %39 : vector<2x8xf32> to vector<2x8x1xf32>
    %41 = tpu.reciprocal %40 {approx = true} : vector<2x8x1xf32> -> vector<2x8x1xf32>
    %42 = vector.broadcast %41 : vector<2x8x1xf32> to vector<2x8x8xf32>
    %43 = arith.mulf %38, %42 : vector<2x8x8xf32>
    %cst_28 = arith.constant dense<0.000000e+00> : vector<2x8x32xf32>
    %44 = tpu.matmul %43, %24, %cst_28 {dimension_numbers = #tpu.dot_dimension_numbers<[2], [1], [1], [2], [0, 0, 0, 1, 1, 2], [0], [0]>} : vector<2x8x8xf32>, vector<2x8x32xf32>, vector<2x8x32xf32> -> vector<2x8x32xf32>
    %45 = vector.shape_cast %4 : vector<8x32xf32> to vector<1x8x32xf32>
    %46 = vector.broadcast %45 : vector<1x8x32xf32> to vector<2x8x32xf32>
    %47 = arith.mulf %44, %46 : vector<2x8x32xf32>
    %cst_29 = arith.constant dense<0.000000e+00> : vector<2x32xf32>
    %48 = vector.multi_reduction <add>, %47, %cst_29 [1] : vector<2x8x32xf32> to vector<2x32xf32>
    %49 = arith.truncf %48 : vector<2x32xf32> to vector<2x32xbf16>
    %c0_30 = arith.constant 0 : index
    %c0_31 = arith.constant 0 : index
    %50 = vector.load %arg9[%c0_30, %c0_31] : memref<32x32xbf16, #tpu.memory_space<vmem>>, vector<32x32xbf16>
    %cst_32 = arith.constant dense<0.000000e+00> : vector<2x32xf32>
    %51 = tpu.matmul %49, %50, %cst_32 {dimension_numbers = #tpu.dot_dimension_numbers<[1], [0], [0], [1], [0, 0, 1, 1], [], []>} : vector<2x32xbf16>, vector<32x32xbf16>, vector<2x32xf32> -> vector<2x32xf32>
    %c0_33 = arith.constant 0 : index
    %c0_34 = arith.constant 0 : index
    %52 = vector.load %arg13[%c0_33, %c0_34] : memref<1x32xf32, #tpu.memory_space<vmem>>, vector<1x32xf32>
    %53 = vector.broadcast %52 : vector<1x32xf32> to vector<2x32xf32>
    %54 = arith.addf %51, %53 : vector<2x32xf32>
    %c0_35 = arith.constant 0 : index
    %c0_36 = arith.constant 0 : index
    %55 = vector.load %arg14[%c0_35, %c0_36] : memref<2x32xf32, #tpu.memory_space<vmem>>, vector<2x32xf32>
    tpu.vector_store %arg14[%c0_35, %c0_36], %54 {strides = array<i32>} : memref<2x32xf32, #tpu.memory_space<vmem>>, vector<2x32xf32>,
    %cst_37 = arith.constant dense<0.000000e+00> : vector<2x8xf32>
    %56 = vector.multi_reduction <add>, %43, %cst_37 [1] : vector<2x8x8xf32> to vector<2x8xf32>
    %cst_38 = arith.constant 1.250000e-01 : f32
    %57 = vector.broadcast %cst_38 : f32 to vector<2x8xf32>
    %58 = arith.mulf %56, %57 : vector<2x8xf32>
    %c0_39 = arith.constant 0 : index
    %c0_40 = arith.constant 0 : index
    %59 = vector.load %arg15[%c0_39, %c0_40] : memref<2x8xf32, #tpu.memory_space<vmem>>, vector<2x8xf32>
    tpu.vector_store %arg15[%c0_39, %c0_40], %58 {strides = array<i32>} : memref<2x8xf32, #tpu.memory_space<vmem>>, vector<2x8xf32>,
    return
  }
  func.func @transform_0(%arg0: i32) -> (i32, i32) {
    %c0_i32 = arith.constant 0 : i32
    %c0_i32_0 = arith.constant 0 : i32
    return %arg0, %c0_i32 : i32, i32
  }
  func.func @transform_1(%arg0: i32) -> (i32, i32, i32) {
    %c0_i32 = arith.constant 0 : i32
    %c0_i32_0 = arith.constant 0 : i32
    %c0_i32_1 = arith.constant 0 : i32
    return %arg0, %c0_i32, %c0_i32_0 : i32, i32, i32
  }
  func.func @transform_2(%arg0: i32) -> (i32, i32, i32) {
    %c0_i32 = arith.constant 0 : i32
    %c0_i32_0 = arith.constant 0 : i32
    %c0_i32_1 = arith.constant 0 : i32
    return %arg0, %c0_i32, %c0_i32_0 : i32, i32, i32
  }
  func.func @transform_3(%arg0: i32) -> (i32, i32) {
    %c0_i32 = arith.constant 0 : i32
    %c0_i32_0 = arith.constant 0 : i32
    return %arg0, %c0_i32 : i32, i32
  }
  func.func @transform_4(%arg0: i32) -> (i32, i32) {
    %c0_i32 = arith.constant 0 : i32
    %c0_i32_0 = arith.constant 0 : i32
    %c0_i32_1 = arith.constant 0 : i32
    return %c0_i32, %c0_i32_0 : i32, i32
  }
  func.func @transform_5(%arg0: i32) -> (i32, i32) {
    %c0_i32 = arith.constant 0 : i32
    %c0_i32_0 = arith.constant 0 : i32
    %c0_i32_1 = arith.constant 0 : i32
    return %c0_i32, %c0_i32_0 : i32, i32
  }
  func.func @transform_6(%arg0: i32) -> (i32, i32) {
    %c0_i32 = arith.constant 0 : i32
    %c0_i32_0 = arith.constant 0 : i32
    %c0_i32_1 = arith.constant 0 : i32
    return %c0_i32, %c0_i32_0 : i32, i32
  }
  func.func @transform_7(%arg0: i32) -> (i32, i32) {
    %c0_i32 = arith.constant 0 : i32
    %c0_i32_0 = arith.constant 0 : i32
    %c0_i32_1 = arith.constant 0 : i32
    return %c0_i32, %c0_i32_0 : i32, i32
  }
  func.func @transform_8(%arg0: i32) -> (i32, i32) {
    %c0_i32 = arith.constant 0 : i32
    %c0_i32_0 = arith.constant 0 : i32
    %c0_i32_1 = arith.constant 0 : i32
    return %c0_i32, %c0_i32_0 : i32, i32
  }
  func.func @transform_9(%arg0: i32) -> (i32, i32) {
    %c0_i32 = arith.constant 0 : i32
    %c0_i32_0 = arith.constant 0 : i32
    %c0_i32_1 = arith.constant 0 : i32
    return %c0_i32, %c0_i32_0 : i32, i32
  }
  func.func @transform_10(%arg0: i32) -> (i32, i32) {
    %c0_i32 = arith.constant 0 : i32
    %c0_i32_0 = arith.constant 0 : i32
    %c0_i32_1 = arith.constant 0 : i32
    return %c0_i32, %c0_i32_0 : i32, i32
  }
  func.func @transform_11(%arg0: i32) -> (i32, i32) {
    %c0_i32 = arith.constant 0 : i32
    %c0_i32_0 = arith.constant 0 : i32
    %c0_i32_1 = arith.constant 0 : i32
    return %c0_i32, %c0_i32_0 : i32, i32
  }
  func.func @transform_12(%arg0: i32) -> (i32, i32) {
    %c0_i32 = arith.constant 0 : i32
    %c0_i32_0 = arith.constant 0 : i32
    %c0_i32_1 = arith.constant 0 : i32
    return %c0_i32, %c0_i32_0 : i32, i32
  }
  func.func @transform_13(%arg0: i32) -> (i32, i32) {
    %c0_i32 = arith.constant 0 : i32
    %c0_i32_0 = arith.constant 0 : i32
    return %arg0, %c0_i32 : i32, i32
  }
  func.func @transform_14(%arg0: i32) -> (i32, i32) {
    %c0_i32 = arith.constant 0 : i32
    %c0_i32_0 = arith.constant 0 : i32
    return %arg0, %c0_i32 : i32, i32
  }
}

</mosaic_0001>

<bundles_post_ra>
// kernel: multihead_attention_global_head.1
= control target key start
LH: loop header
LB: loop body
LE: loop exit
PB: predicated region body
PF: predicated region fallthrough
CT: control target
= control target key end

     0   :  { %20 = vsyncpa [#allocation3], 0  ;;  %v968_v1 = vmov 0.0   ;;  %vm969_vm0 = vmmov 0   ;;  %vm81_vm1 = vcmask 261120   ;;  %s1187_s0 = inlined_call_operand.vmem [shape: bf16[2,32], index: 0, kind: input, shape index: {}]   ;;  %s1188_s1 = inlined_call_operand.vmem [shape: bf16[2,8,32], index: 1, kind: input, shape index: {}]   ;;  %s1189_s2 = inlined_call_operand.vmem [shape: bf16[2,8,32], index: 2, kind: input, shape index: {}]   ;;  %s1190_s3 = inlined_call_operand.vmem [shape: f32[2,8], index: 3, kind: input, shape index: {}]   ;;  %s1191_s4 = inlined_call_operand.vmem [shape: f32[8,32], index: 4, kind: input, shape index: {}]   ;;  %s1192_s5 = inlined_call_operand.vmem [shape: bf16[32,32], index: 5, kind: input, shape index: {}]   ;;  %s1193_s6 = inlined_call_operand.vmem [shape: bf16[32,32], index: 6, kind: input, shape index: {}]   ;;  %s1194_s7 = inlined_call_operand.vmem [shape: bf16[32,32], index: 7, kind: input, shape index: {}]   ;;  %s1195_s8 = inlined_call_operand.vmem [shape: bf16[32,32], index: 8, kind: input, shape index: {}]   ;;  %s1196_s9 = inlined_call_operand.vmem [shape: f32[1,32], index: 9, kind: input, shape index: {}]   ;;  %s1197_s10 = inlined_call_operand.vmem [shape: f32[1,32], index: 10, kind: input, shape index: {}]   ;;  %s1198_s11 = inlined_call_operand.vmem [shape: f32[1,32], index: 11, kind: input, shape index: {}]   ;;  %s1199_s12 = inlined_call_operand.vmem [shape: f32[1,32], index: 12, kind: input, shape index: {}]   ;;  %s1200_s13 = inlined_call_operand.hbm [shape: f32[2,32], index: 13, kind: output, shape index: {0}]   ;;  %s1201_s14 = inlined_call_operand.hbm [shape: f32[2,8], index: 14, kind: output, shape index: {1}]  }
   0x1   :  { %v903_v0 = vld [vmem:[%s1192_s5] sm:$0xff]   ;;  %846 = vmatprep.subr.bf16.mxu0 %v968_v1  ;;  %854 = vmatprep.subr.bf16.mxu1 %v968_v1  ;;  %v905_v3 = vld [vmem:[%s1192_s5 + $0x8] sm:$0xff]  }
   0x2   :  { %v904_v2 = vld [vmem:[%s1193_s6] sm:$0xff]   ;;  %847 = vmatpush3.bf16.msra.mxu0 %v903_v0  ;;  %850 = vmatprep.mubr.msk.bf16.mxu0 %vm969_vm0, %v968_v1  ;;  %v906_v4 = vld [vmem:[%s1193_s6 + $0x8] sm:$0xff]  }
   0x3   :  { %855 = vmatpush3.bf16.msra.mxu1 %v904_v2  ;;  %848 = vmatprep.subr.bf16.mxu0 %v968_v1  ;;  %v1071_v5 = vld [vmem:[%s1188_s1] sm:$0xf]  ;;  %v50_v6 = vld [vmem:[%s1188_s1 + $0x4] sm:$0xf] }
   0x4   :  { %856 = vmatprep.subr.bf16.mxu1 %v968_v1  ;;  %858 = vmatprep.mubr.msk.bf16.mxu1 %vm969_vm0, %v968_v1  ;;  %v51_v7 = vld [vmem:[%s1189_s2] sm:$0xf]  ;;  %v52_v8 = vld [vmem:[%s1189_s2 + $0x4] sm:$0xf]  ;;  %v811_v9 = vcombine.low %v1071_v5, %v50_v6 }
   0x5   :  { %v53_v10 = vld [vmem:[%s1187_s0] sm:$0x1]  ;;  %v56_v11 = vadd.bf16 %v51_v7, %v1071_v5  ;;  %v57_v12 = vadd.bf16 %v52_v8, %v50_v6 }
   0x6   :  { %849 = vmatpush3.bf16.msra.mxu0 %v905_v3 }
   0x7   :  { %857 = vmatpush3.bf16.msra.mxu1 %v906_v4  ;;  %862 = vmatprep.subr.bf16.mxu0 %v968_v1  ;;  %v806_v13 = vcombine.low %v56_v11, %v57_v12 }
   0x8   :  { %870 = vmatprep.subr.mxu1 %v968_v1 }
   0x9   :  { %851 = vmatmul.mubr.msk.bf16.vlgmr.msra.gmra.mrb[0].mxu0 %vm81_vm1, %v53_v10 }
   0xa   :  { %21 = vsyncpa [#allocation5], 0  ;;  %859 = vmatmul.mubr.msk.bf16.vlgmr.msra.gmra.mrb[0].mxu1 %vm81_vm1, %v806_v13  ;;  %866 = vmatprep.mubr.msk.bf16.mxu0 %vm969_vm0, %v968_v1  ;;  %v970_v14 = vmov 1966171168   ;;  %v273_v16 = vlaneseq  ;;  %v801_v19 = vld [vmem:[%s1196_s9] ss:$0 sm:$0xff] }
   0xb   :  { %872 = vmatprep.mubr.msk.f32.mxu1 %vm969_vm0, %v968_v1  ;;  %v271_v15 = vunpack.c.l.s4 %v970_v14  ;;  %v805_v21 = vld [vmem:[%s1197_s10] ss:$0 sm:$0xff]  ;;  %v909_v44 = vld [vmem:[%s1194_s7 + $0x8] sm:$0xff]   ;;  %vm489_vm2 = vcmask 64512   ;;  %vm691_vm3 = vcmask 1041409   ;;  %vm771_vm4 = vcmask 58368  }
   0xc   :  { %v274_v18 = vshrl.u32 %v273_v16, 7  ;;  %v1106_v36 = vld [vmem:[%s1191_s4] sm:$0xff] }
   0xd   :  { %v272_v17 = vunpack.c.0.s8 %v271_v15  ;;  %v908_v43 = vld [vmem:[%s1194_s7] sm:$0xff]  }
   0xe   :  { %v294_v30 = vsub.s32 0, %v274_v18  ;;  %863 = vmatpush3.bf16.msra.mxu0 %v908_v43  ;;  %v815_v45 = vld.sshfl [vmem:[%s1190_s3] sm:$0x11 pattern:$0x75316420] }
   0xf   :  { %v275_v20 = vsub.s32 %v272_v17, %v274_v18  ;;  %864 = vmatprep.subr.bf16.mxu0 %v968_v1  ;;  %v312_v47 = vcombine.high %v815_v45, %v815_v45  ;;  %v810_v8 = vld [vmem:[%s1198_s11] ss:$0 sm:$0xff] }
  0x11   :  { %v319_v46 = vrot.slane %v815_v45, %v275_v20  ;;  %v326_v49 = vrot.slane %v312_v47, %v275_v20 }
  0x12   :  { %865 = vmatpush3.bf16.msra.mxu0 %v909_v44 }
  0x13   :  { %890 = vmatprep.subr.bf16.mxu0 %v968_v1  ;;  %v330_v48 = vrot.slane %v319_v46, %v294_v30  ;;  %v334_v53 = vrot.slane %v326_v49, %v294_v30 }
  0x15   :  { %867 = vmatmul.mubr.msk.bf16.vlgmr.msra.gmra.mrb[4].mxu0 %vm81_vm1, %v811_v9 }
  0x16   :  { %894 = vmatprep.mubr.msk.bf16.mxu0 %vm969_vm0, %v968_v1 }
  0xdc   :  { %v119_v22 = vpop.f32.mrb[0].mxu0 }
  0xdd   :  { %v120_v23 = vadd.f32 %v801_v19, %v119_v22  ;;  %v190_v24 = vpop.f32.mrb[0].mxu1  ;;  %v852_v25 = vpop.f32.mrb[1].mxu0 }
  0xde   :  { %v191_v26 = vadd.f32 %v805_v21, %v190_v24  ;;  %v860_v27 = vpop.f32.mrb[1].mxu1  ;;  %v122_v28 = vpop.f32.mrb[2].mxu0 }
  0xdf   :  { %v276_v29 = vrot.slane %v120_v23, %v275_v20  ;;  %v193_v31 = vpop.f32.mrb[2].mxu1  ;;  %v853_v32 = vpop.f32.mrb[3].mxu0 }
  0xe0   :  { %v861_v33 = vpop.f32.mrb[3].mxu1  ;;  %871 = vmatpush3.xpose.msk.msra.mxu1 %vm81_vm1, %v191_v26  ;;  %v194_v41 = vadd.f32 %v805_v21, %v193_v31 }
  0xe1   :  { %v277_v34 = vcombine.high %v276_v29, %v276_v29  ;;  %v284_v35 = vrot.slane %v276_v29, %v275_v20  ;;  %875 = vmatprep.subr.mxu1 %v968_v1 }
  0xe3   :  { %v291_v37 = vrot.slane %v277_v34, %v275_v20  ;;  %v295_v38 = vrot.slane %v284_v35, %v294_v30 }
  0xe5   :  { %v299_v39 = vrot.slane %v291_v37, %v294_v30  ;;  %v302_v40 = vmul.f32 %v295_v38, %v1106_v36  ;;  %v910_v37 = vld [vmem:[%s1195_s8] sm:$0xff]   ;;  %v911_v38 = vld [vmem:[%s1195_s8 + $0x8] sm:$0xff]   ;;  %s971_s8 = smov [#allocation4]  }
  0xe6   :  { %891 = vmatpush3.bf16.msra.mxu0 %v910_v37  ;;  %s789_s22 = sshll.u32 %s971_s8, 4  ;;  %s790_s22 = int_to_ptr.vmem [resolvable:$true] %s789_s22 }
  0xe7   :  { %873 = vmatmul.mubr.msk.f32.vlgmr.msra.gmra.mrb[4].mxu1 %vm81_vm1, %v302_v40  ;;  %v303_v42 = vmul.f32 %v299_v39, %v1106_v36  ;;  %892 = vmatprep.subr.bf16.mxu0 %v968_v1  ;;  %s920_s5 = scalar_lea.vmem %s790_s22, 32  ;;  %p925_p1 = scmp.lt.s32.totalorder %s790_s22, %s790_s22 }
  0xe8   :  { %876 = vmatpush3.xpose.msk.msra.mxu1 %vm81_vm1, %v194_v41  ;;  %877 = vmatprep.mubr.msk.f32.mxu1 %vm969_vm0, %v968_v1  ;;  %v262_v6 = vpop.f32.mrb[4].mxu0  ;;  %p921_p0 = scmp.ne.s32.totalorder %s790_s22, %s920_s5  ;;  %p926_p2 = scmp.lt.s32.totalorder %s920_s5, %s920_s5 }
  0xe9   :  { %880 = vmatprep.subr.mxu1 %v968_v1  ;;  %v868_v7 = vpop.f32.mrb[5].mxu0  ;;  %v263_v10 = vadd.f32 %v810_v8, %v262_v6 }
  0xea   :  { %v265_v9 = vpop.f32.mrb[6].mxu0  ;;  %893 = vmatpush3.bf16.msra.mxu0 %v911_v38  ;;  %p927_p3 = por %p926_p2, %p925_p1 }
  0xeb   :  { %878 = vmatmul.mubr.msk.f32.vlgmr.msra.gmra.mrb[6].mxu1 %vm81_vm1, %v303_v42  ;;  %v869_v11 = vpop.f32.mrb[7].mxu0  ;;  %v266_v12 = vadd.f32 %v810_v8, %v265_v9 }
  0xec   :  { %882 = vmatprep.mubr.msk.f32.mxu1 %vm969_vm0, %v968_v1  ;;  %881 = vmatpush3.msra.mxu1 %v263_v10  ;;  %p928_p4 = pnand %p927_p3, %p921_p0 }
  0xed   :  { %885 = vmatprep.subr.mxu1 %v968_v1 }
 0x1ba   :  { %v409_v50 = vpop.f32.mrb[4].mxu1 }
 0x1bb   :  { %v410_v51 = vadd.f32 %v409_v50, %v330_v48  ;;  %v874_v52 = vpop.f32.mrb[5].mxu1 }
 0x1bd   :  { %v490_v54 = vsel %vm489_vm2, %v410_v51, -inf }
 0x1be   :  { %491 = vmax.xlane.f32.xlu0 %v490_v54  ;;  %v485_v55 = vpop.f32.mrb[6].mxu1 }
 0x1bf   :  { %v486_v56 = vadd.f32 %v485_v55, %v334_v53  ;;  %v879_v57 = vpop.f32.mrb[7].mxu1 }
 0x1c1   :  { %v493_v58 = vsel %vm489_vm2, %v486_v56, -inf }
 0x1c2   :  { %494 = vmax.xlane.f32.xlu0 %v493_v58 }
 0x24b   :  { %v492_v59 = vpop.xlane.xlu0 %491 }
 0x24c   :  { %v496_v60 = vsub.f32 %v410_v51, %v492_v59 }
 0x24e   :  { %v498_v61 = vmul.f32 1.442695, %v496_v60 }
 0x24f   :  { %v495_v62 = vpop.xlane.xlu0 %494 }
 0x250   :  { %912 = vpow2.f32 %v498_v61  ;;  %v497_v63 = vsub.f32 %v486_v56, %v495_v62 }
 0x252   :  { %v500_v0 = vmul.f32 1.442695, %v497_v63 }
 0x254   :  { %914 = vpow2.f32 %v500_v0 }
 0x25a   :  { %v913_v2 = vpop.eup %912 }
 0x25b   :  { %v502_v3 = vsel %vm489_vm2, %v913_v2, 0.0 }
 0x25c   :  { %503 = vadd.xlane.f32.xlu1 %v502_v3 }
 0x25e   :  { %v915_v4 = vpop.eup %914 }
 0x25f   :  { %v505_v5 = vsel %vm489_vm2, %v915_v4, 0.0 }
 0x260   :  { %506 = vadd.xlane.f32.xlu1 %v505_v5 }
 0x2e9   :  { %v504_v13 = vpop.xlane.xlu1 %503 }
 0x2ea   :  { %916 = vrcp.f32 %v504_v13 }
 0x2ed   :  { %v507_v14 = vpop.xlane.xlu1 %506 }
 0x2ee   :  { %918 = vrcp.f32 %v507_v14 }
 0x2f4   :  { %v917_v15 = vpop.eup %916 }
 0x2f5   :  { %v510_v16 = vmul.f32 %v917_v15, %v913_v2 }
 0x2f7   :  { %883 = vmatmul.mubr.msk.f32.vlgmr.msra.gmra.mrb[8].mxu1 %vm489_vm2, %v510_v16  ;;  %v751_v17 = vsel %vm489_vm2, %v510_v16, 0.0 }
 0x2f8   :  { %v919_v18 = vpop.eup %918  ;;  %886 = vmatpush3.msra.mxu1 %v266_v12  ;;  %887 = vmatprep.mubr.msk.f32.mxu1 %vm969_vm0, %v968_v1  ;;  %v752_v19 = vrot.slane %v751_v17, 4 }
 0x2f9   :  { %v511_v20 = vmul.f32 %v919_v18, %v915_v4 }
 0x2fa   :  { %v753_v21 = vadd.f32 %v752_v19, %v751_v17 }
 0x2fb   :  { %888 = vmatmul.mubr.msk.f32.vlgmr.msra.gmra.mrb[10].mxu1 %vm489_vm2, %v511_v20  ;;  %v758_v22 = vsel %vm489_vm2, %v511_v20, 0.0 }
 0x2fc   :  { %v754_v23 = vrot.slane %v753_v21, 2  ;;  %v759_v24 = vrot.slane %v758_v22, 4 }
 0x2fe   :  { %v755_v25 = vadd.f32 %v754_v23, %v753_v21  ;;  %v760_v26 = vadd.f32 %v759_v24, %v758_v22 }
 0x300   :  { %v756_v27 = vrot.slane %v755_v25, 1  ;;  %v761_v28 = vrot.slane %v760_v26, 2 }
 0x302   :  { %v762_v29 = vadd.f32 %v761_v28, %v760_v26  ;;  %v757_v30 = vadd.f32 %v756_v27, %v755_v25 }
 0x304   :  { %v763_v31 = vrot.slane %v762_v29, 1  ;;  %v765_v33 = vmul.f32 0.125, %v757_v30 }
 0x306   :  { %v764_v32 = vadd.f32 %v763_v31, %v762_v29 }
 0x308   :  { %v766_v34 = vmul.f32 0.125, %v764_v32 }
 0x30a   :  { %v769_v35 = vsel %vm691_vm3, %v766_v34, %v765_v33 }
 0x30b   :  { %772 = vst.msk [vmem:[#allocation4] sm:$0x3] %vm771_vm4, %v769_v35 }
 0x3ca   :  { %v581_v39 = vpop.f32.mrb[8].mxu1 }
 0x3cb   :  { %v658_v40 = vmul.f32 %v581_v39, %v1106_v36  ;;  %v884_v41 = vpop.f32.mrb[9].mxu1 }
 0x3cd   :  { %v660_v42 = vsel %vm81_vm1, %v658_v40, 0.0 }
 0x3ce   :  { %v661_v43 = vrot.slane %v660_v42, 4  ;;  %v654_v44 = vpop.f32.mrb[10].mxu1 }
 0x3cf   :  { %v659_v45 = vmul.f32 %v654_v44, %v1106_v36  ;;  %v889_v46 = vpop.f32.mrb[11].mxu1 }
 0x3d0   :  { %v662_v47 = vadd.f32 %v661_v43, %v660_v42 }
 0x3d1   :  { %v667_v48 = vsel %vm81_vm1, %v659_v45, 0.0 }
 0x3d2   :  { %v663_v1 = vrot.slane %v662_v47, 2  ;;  %v668_v49 = vrot.slane %v667_v48, 4 }
 0x3d4   :  { %v664_v50 = vadd.f32 %v663_v1, %v662_v47  ;;  %v669_v51 = vadd.f32 %v668_v49, %v667_v48 }
 0x3d6   :  { %v665_v52 = vrot.slane %v664_v50, 1  ;;  %v670_v53 = vrot.slane %v669_v51, 2 }
 0x3d8   :  { %v666_v54 = vadd.f32 %v665_v52, %v664_v50  ;;  %v671_v55 = vadd.f32 %v670_v53, %v669_v51 }
 0x3da   :  { %v672_v56 = vrot.slane %v671_v55, 1  ;;  %v674_v57 = vpack.c.bf16 %v666_v54, %v666_v54 }
 0x3dc   :  { %v673_v58 = vadd.f32 %v672_v56, %v671_v55  ;;  %v689_v60 = vunpack.c.l.b16 %v674_v57 }
 0x3de   :  { %v675_v59 = vpack.c.bf16 %v673_v58, %v673_v58 }
 0x3e0   :  { %v690_v61 = vunpack.c.l.b16 %v675_v59 }
 0x3e2   :  { %v692_v36 = vsel %vm691_vm3, %v690_v61, %v689_v60 }
 0x3e3   :  { %v693_v62 = vpack.c.b16 %v692_v36, %v692_v36 }
 0x3e5   :  { %895 = vmatmul.mubr.msk.bf16.vlgmr.msra.gmra.mrb[8].mxu0 %vm81_vm1, %v693_v62 }
 0x3e6   :  { %931 = shalt.err (!%p928_p4)
}
 0x3e7   :  { %s932_s25 = scalar_lea.hbm %s1201_s14, 32 }
 0x3e8   :  { %p933_p5 = scmp.ne.s32.totalorder %s1201_s14, %s932_s25  ;;  %p936_p6 = scmp.lt.u32.totalorder %s932_s25, %s1201_s14 }
 0x3ea   :  { %p938_p7 = pnand %p936_p6, %p933_p5 }
 0x3ec   :  { %941 = shalt.err (!%p938_p7)
}
 0x3ed   :  { %792 = dma.vmem_to_hbm [thread:$0]  %s790_s22, 32, %s1201_s14, [#allocation5]   ;;  %v822_v63 = vld [vmem:[%s1199_s12] ss:$0 sm:$0xff]  ;;  %vm749_vm5 = vcmask 254976  }
 0x3ee   :  { %s972_s9 = smov [#allocation2]  }
 0x3ef   :  { %s779_s10 = sshll.u32 %s972_s9, 4  ;;  %s780_s10 = int_to_ptr.vmem [resolvable:$true] %s779_s10 }
 0x3f0   :  { %s942_s4 = scalar_lea.vmem %s780_s10, 32  ;;  %p947_p9 = scmp.lt.s32.totalorder %s780_s10, %s780_s10 }
 0x3f1   :  { %p943_p8 = scmp.ne.s32.totalorder %s780_s10, %s942_s4  ;;  %p948_p10 = scmp.lt.s32.totalorder %s942_s4, %s942_s4 }
 0x3f3   :  { %p949_p11 = por %p948_p10, %p947_p9 }
 0x3f5   :  { %p950_p12 = pnand %p949_p11, %p943_p8 }
 0x4b8   :  { %v743_v0 = vpop.f32.mrb[8].mxu0 }
 0x4b9   :  { %v744_v2 = vadd.f32 %v822_v63, %v743_v0  ;;  %v896_v3 = vpop.f32.mrb[9].mxu0 }
 0x4ba   :  { %v746_v4 = vpop.f32.mrb[10].mxu0 }
 0x4bb   :  { %v897_v5 = vpop.f32.mrb[11].mxu0  ;;  %750 = vst.msk [vmem:[#allocation2] sm:$0x3] %vm749_vm5, %v744_v2 }
 0x4bc   :  { %953 = shalt.err (!%p950_p12)
}
 0x4bd   :  { %s954_s12 = scalar_lea.hbm %s1200_s13, 32 }
 0x4be   :  { %p955_p13 = scmp.ne.s32.totalorder %s1200_s13, %s954_s12  ;;  %p958_p0 = scmp.lt.u32.totalorder %s954_s12, %s1200_s13 }
 0x4c0   :  { %p960_p1 = pnand %p958_p0, %p955_p13 }
 0x4c2   :  { %963 = shalt.err (!%p960_p1)
}
 0x4c3   :  { %782 = dma.vmem_to_hbm [thread:$0]  %s780_s10, 32, %s1200_s13, [#allocation3]  }
 0x4c4   :  { %964 = dma.done.wait [#allocation3], 32  }
 0x4c5   :  { %965 = vsyncadd [#allocation3], 4294967264 }
 0x4c6   :  { %966 = dma.done.wait [#allocation5], 32  }
 0x4c7   :  { %967 = vsyncadd [#allocation5], 4294967264 }
 0x4c8   :  { %799 = vsyncpa [#allocation3], 1 }
 0x4c9   :  { %800 = vsyncpa [#allocation5], 1 }

</bundles_post_ra>
